<compile_context>
chip_gen: v7x
topology: tpu7x:2x2x1
jax: 0.10.0
libtpu: 0.0.40
codegen_flags: <defaults>
</compile_context>

<pallas_src>
import functools
import math

import jax
import jax.numpy as jnp
from jax.experimental import pallas as pl
from jax.experimental.pallas import tpu as pltpu

_MASK_VALUE = -0.7 * float(jnp.finfo(jnp.float32).max)


# ---------------------------------------------------------------------------
# Pallas kernel: online-softmax flash attention over KV blocks.
# Grid = (batch*heads, num_q_blocks, num_kv_blocks); KV axis is the trailing
# "arbitrary" reduction axis; VMEM scratch carries running max / denom / acc.
# ---------------------------------------------------------------------------
def _flash_fwd_kernel(q_ref, k_ref, v_ref, o_ref, m_sc, l_sc, acc_sc, *,
                      softmax_scale, causal, block_q, block_k, kv_len):
    qi = pl.program_id(1)
    kv = pl.program_id(2)

    @pl.when(kv == 0)
    def _init():
        m_sc[...] = jnp.full_like(m_sc, -jnp.inf)
        l_sc[...] = jnp.zeros_like(l_sc)
        acc_sc[...] = jnp.zeros_like(acc_sc)

    def _update():
        # Fold the softmax scale into the (block_q, head_dim) Q tile instead of
        # the (block_q, block_k) score tile: ~block_k/head_dim fewer multiplies.
        q = q_ref[0] * softmax_scale          # (block_q, head_dim)
        k = k_ref[0]                          # (block_k, head_dim)
        v = v_ref[0]                          # (block_k, head_dim)

        # QK^T as a direct contraction over head_dim; the MXU consumes the
        # transposed operand natively (no explicit k.T copy).
        s = jax.lax.dot_general(
            q, k, (((1,), (1,)), ((), ())),
            preferred_element_type=jnp.float32)           # (block_q, block_k)

        need_kv_mask = (kv_len % block_k) != 0            # static
        mask = None
        if causal or need_kv_mask:
            k_idx = kv * block_k + jax.lax.broadcasted_iota(
                jnp.int32, (block_q, block_k), 1)
            if need_kv_mask:                              # mask padded K cols
                mask = k_idx < kv_len
            if causal:
                q_idx = qi * block_q + jax.lax.broadcasted_iota(
                    jnp.int32, (block_q, block_k), 0)
                causal_mask = k_idx <= q_idx
                mask = causal_mask if mask is None else (mask & causal_mask)
        if mask is not None:
            s = jnp.where(mask, s, _MASK_VALUE)

        m_prev = m_sc[...]                                    # (block_q, 1)
        m_new = jnp.maximum(m_prev, s.max(axis=-1, keepdims=True))
        alpha = jnp.exp(m_prev - m_new)
        p = jnp.exp(s - m_new)                                # (block_q, block_k)

        l_sc[...] = alpha * l_sc[...] + p.sum(axis=-1, keepdims=True)
        acc_sc[...] = alpha * acc_sc[...] + jnp.dot(
            p.astype(v.dtype), v, preferred_element_type=jnp.float32)
        m_sc[...] = m_new

    if causal:
        # Skip KV blocks that lie entirely above the diagonal for this Q block.
        @pl.when(kv * block_k <= (qi + 1) * block_q - 1)
        def _maybe_update():
            _update()
    else:
        _update()

    @pl.when(kv == pl.num_programs(2) - 1)
    def _finalize():
        inv_l = pl.reciprocal(l_sc[...], approx=True)
        o_ref[0] = (acc_sc[...] * inv_l).astype(o_ref.dtype)


def _flash_attention_bhsd(q, k, v, *, softmax_scale, causal,
                          block_q=256, block_k=512):
    """q/k/v: [BH, S, D] -> out [BH, S, D]."""
    bh, seq_len, head_dim = q.shape
    block_q = min(block_q, seq_len)
    block_k = min(block_k, seq_len)

    # Pad to block multiples (no-op when already aligned). Padded K/V columns
    # are masked inside the kernel; padded Q rows are sliced off afterwards.
    q_pad = (-seq_len) % block_q
    kv_pad = (-seq_len) % block_k
    if q_pad:
        q = jnp.pad(q, ((0, 0), (0, q_pad), (0, 0)))
    if kv_pad:
        k = jnp.pad(k, ((0, 0), (0, kv_pad), (0, 0)))
        v = jnp.pad(v, ((0, 0), (0, kv_pad), (0, 0)))
    q_len = seq_len + q_pad
    kv_len_padded = seq_len + kv_pad

    grid = (bh, q_len // block_q, kv_len_padded // block_k)

    kernel = functools.partial(
        _flash_fwd_kernel,
        softmax_scale=softmax_scale,
        causal=causal,
        block_q=block_q,
        block_k=block_k,
        kv_len=seq_len,
    )

    out = pl.pallas_call(
        kernel,
        out_shape=jax.ShapeDtypeStruct((bh, q_len, head_dim), q.dtype),
        grid_spec=pltpu.PrefetchScalarGridSpec(
            num_scalar_prefetch=0,
            grid=grid,
            in_specs=[
                pl.BlockSpec((1, block_q, head_dim), lambda b, i, j: (b, i, 0)),
                pl.BlockSpec((1, block_k, head_dim), lambda b, i, j: (b, j, 0)),
                pl.BlockSpec((1, block_k, head_dim), lambda b, i, j: (b, j, 0)),
            ],
            out_specs=pl.BlockSpec((1, block_q, head_dim),
                                   lambda b, i, j: (b, i, 0)),
            scratch_shapes=[
                pltpu.VMEM((block_q, 1), jnp.float32),          # running max
                pltpu.VMEM((block_q, 1), jnp.float32),          # running denom
                pltpu.VMEM((block_q, head_dim), jnp.float32),   # running acc
            ],
        ),
        compiler_params=pltpu.CompilerParams(
            dimension_semantics=("parallel", "parallel", "arbitrary"),
            vmem_limit_bytes=32 * 1024 * 1024),
    )(q, k, v)

    if q_pad:
        out = out[:, :seq_len]
    return out


# ---------------------------------------------------------------------------
# Module-equivalent wrapper (mirrors FlashAttention3.forward defaults).
# ---------------------------------------------------------------------------
@functools.partial(
    jax.jit,
    static_argnames=("causal", "softmax_scale", "precision",
                     "normalize_query", "block_q", "block_k"))
def _flash_attention_bshd(q, k, v, *, causal, softmax_scale, precision,
                          normalize_query, block_q, block_k):
    # q, k, v: [batch, seq, heads, head_dim]
    orig_dtype = q.dtype
    # TODO(synk): TPU MXU has no native fp16; bf16 is used as the
    # half-precision analogue of the module's 'fp16' mode.
    compute_dtype = jnp.float32 if precision == "fp32" else jnp.bfloat16
    q = q.astype(compute_dtype)
    k = k.astype(compute_dtype)
    v = v.astype(compute_dtype)

    if normalize_query:
        q = (q.astype(jnp.float32) /
             jnp.sqrt(jnp.sum(q.astype(jnp.float32) ** 2, axis=-1,
                              keepdims=True) + 1e-12)).astype(compute_dtype)

    b, s, h, d = q.shape
    scale = softmax_scale if softmax_scale is not None else 1.0 / math.sqrt(d)

    # [B, S, H, D] -> [B*H, S, D] so seq -> sublanes, head_dim -> lanes inside
    # the kernel (contiguous per-head rows for large DMAs). Under jit the
    # transpose fuses with the dtype cast (single HBM pass per tensor).
    def to_bhsd(x):
        return jnp.transpose(x, (0, 2, 1, 3)).reshape(b * h, s, d)

    out = _flash_attention_bhsd(
        to_bhsd(q), to_bhsd(k), to_bhsd(v),
        softmax_scale=scale, causal=causal,
        block_q=block_q, block_k=block_k)

    out = out.reshape(b, h, s, d).transpose(0, 2, 1, 3)
    return out.astype(orig_dtype)


class FlashAttention3:
    def __init__(self, block_size=None, causal=False, softmax_scale=None,
                 precision="fp16", normalize_query=False,
                 block_q=256, block_k=512):
        # TODO(synk): dropout_p>0, return_softmax=True and explicit mask paths
        # not implemented (module defaults are 0.0 / False / None).
        # `block_size` mirrors the PyTorch config knob; if given explicitly it
        # overrides the larger TPU-tuned tile defaults (results are identical,
        # tiling is a perf detail only).
        if block_size is not None:
            block_q = block_size
            block_k = block_size
        if precision not in ("fp16", "bf16", "fp32"):
            raise ValueError(f"Unsupported precision mode: {precision}")
        self.block_q = block_q
        self.block_k = block_k
        self.causal = causal
        self.softmax_scale = softmax_scale
        self.precision = precision
        self.normalize_query = normalize_query

    def __call__(self, q, k, v, mask=None):
        # q, k, v: [batch, seq, heads, head_dim]
        assert mask is None, "mask path not implemented (default is None)"
        return _flash_attention_bshd(
            q, k, v,
            causal=self.causal,
            softmax_scale=self.softmax_scale,
            precision=self.precision,
            normalize_query=self.normalize_query,
            block_q=self.block_q,
            block_k=self.block_k)


def _reference_attention(q, k, v, scale, causal=False):
    # q/k/v: [B, S, H, D], fp32 reference
    s = jnp.einsum("bshd,bkhd->bhsk", q, k) * scale
    if causal:
        S = q.shape[1]
        m = jnp.tril(jnp.ones((S, S), dtype=bool))
        s = jnp.where(m[None, None], s, jnp.finfo(s.dtype).min)
    p = jax.nn.softmax(s, axis=-1)
    return jnp.einsum("bhsk,bkhd->bshd", p, v)


if __name__ == "__main__":
    key = jax.random.PRNGKey(0)
    kq, kk, kv_ = jax.random.split(key, 3)

    # --- check 1: default config (non-causal), small shapes -----------------
    batch, seq, heads, head_dim = 2, 8, 4, 32
    q = jax.random.normal(kq, (batch, seq, heads, head_dim), dtype=jnp.float32)
    k = jax.random.normal(kk, (batch, seq, heads, head_dim), dtype=jnp.float32)
    v = jax.random.normal(kv_, (batch, seq, heads, head_dim), dtype=jnp.float32)

    attn = FlashAttention3()  # defaults: non-causal, fp16-mode (bf16 on TPU)
    out = jax.block_until_ready(attn(q, k, v))
    ref = _reference_attention(q, k, v, scale=1.0 / math.sqrt(head_dim))
    assert out.shape == (batch, seq, heads, head_dim)
    assert jnp.allclose(out, ref, atol=3e-2, rtol=3e-2), "mismatch (default)"

    # --- check 2: causal, multi-block with Q/KV tail padding ----------------
    batch2, seq2, heads2, head_dim2 = 1, 320, 2, 64
    k2a, k2b, k2c = jax.random.split(jax.random.PRNGKey(1), 3)
    q2 = jax.random.normal(k2a, (batch2, seq2, heads2, head_dim2), jnp.float32)
    k2 = jax.random.normal(k2b, (batch2, seq2, heads2, head_dim2), jnp.float32)
    v2 = jax.random.normal(k2c, (batch2, seq2, heads2, head_dim2), jnp.float32)

    attn2 = FlashAttention3(causal=True, block_q=128, block_k=256)
    out2 = jax.block_until_ready(attn2(q2, k2, v2))
    rnd = lambda x: x.astype(jnp.bfloat16).astype(jnp.float32)
    ref2 = _reference_attention(rnd(q2), rnd(k2), rnd(v2),
                                scale=1.0 / math.sqrt(head_dim2), causal=True)
    assert out2.shape == (batch2, seq2, heads2, head_dim2)
    assert jnp.allclose(out2, ref2, atol=3e-2, rtol=3e-2), "mismatch (causal)"

    print("KERNEL_OK")
</pallas_src>

<mosaic_0001>
module attributes {stable_mosaic.version = 11 : i64} {
  func.func @_flash_fwd_kernel(%arg0: i32, %arg1: i32, %arg2: i32, %arg3: memref<1x8x32xbf16, #tpu.memory_space<vmem>>, %arg4: memref<1x8x32xbf16, #tpu.memory_space<vmem>>, %arg5: memref<1x8x32xbf16, #tpu.memory_space<vmem>>, %arg6: memref<1x8x32xbf16, #tpu.memory_space<vmem>>, %arg7: memref<8x1xf32, #tpu.memory_space<vmem>>, %arg8: memref<8x1xf32, #tpu.memory_space<vmem>>, %arg9: memref<8x32xf32, #tpu.memory_space<vmem>>) attributes {dimension_semantics = [#tpu.dimension_semantics<parallel>, #tpu.dimension_semantics<parallel>, #tpu.dimension_semantics<arbitrary>], iteration_bounds = array<i64: 8, 1, 1>, scalar_prefetch = 0 : i64, scratch_operands = 3 : i64, tpu.core_type = #tpu.core_type<tc>, window_params = [{transform_indices = @transform_0, window_bounds = array<i64: 1, 8, 32>}, {transform_indices = @transform_1, window_bounds = array<i64: 1, 8, 32>}, {transform_indices = @transform_2, window_bounds = array<i64: 1, 8, 32>}, {transform_indices = @transform_3, window_bounds = array<i64: 1, 8, 32>}]} {
    %c0_i32 = arith.constant 0 : i32
    %0 = arith.cmpi eq, %arg2, %c0_i32 : i32
    %1 = arith.extui %0 : i1 to i32
    %c0_i32_0 = arith.constant 0 : i32
    %2 = arith.cmpi ne, %1, %c0_i32_0 : i32
    scf.if %2 {
      %cst_27 = arith.constant 0xFF800000 : f32
      %38 = vector.broadcast %cst_27 : f32 to vector<8x1xf32>
      %c0_28 = arith.constant 0 : index
      %c0_29 = arith.constant 0 : index
      %39 = vector.load %arg7[%c0_28, %c0_29] : memref<8x1xf32, #tpu.memory_space<vmem>>, vector<8x1xf32>
      tpu.vector_store %arg7[%c0_28, %c0_29], %38 {strides = array<i32>} : memref<8x1xf32, #tpu.memory_space<vmem>>, vector<8x1xf32>,
      %cst_30 = arith.constant 0.000000e+00 : f32
      %40 = vector.broadcast %cst_30 : f32 to vector<8x1xf32>
      %c0_31 = arith.constant 0 : index
      %c0_32 = arith.constant 0 : index
      %41 = vector.load %arg8[%c0_31, %c0_32] : memref<8x1xf32, #tpu.memory_space<vmem>>, vector<8x1xf32>
      tpu.vector_store %arg8[%c0_31, %c0_32], %40 {strides = array<i32>} : memref<8x1xf32, #tpu.memory_space<vmem>>, vector<8x1xf32>,
      %cst_33 = arith.constant 0.000000e+00 : f32
      %42 = vector.broadcast %cst_33 : f32 to vector<8x32xf32>
      %c0_34 = arith.constant 0 : index
      %c0_35 = arith.constant 0 : index
      %43 = vector.load %arg9[%c0_34, %c0_35] : memref<8x32xf32, #tpu.memory_space<vmem>>, vector<8x32xf32>
      tpu.vector_store %arg9[%c0_34, %c0_35], %42 {strides = array<i32>} : memref<8x32xf32, #tpu.memory_space<vmem>>, vector<8x32xf32>,
    } else {
    }
    %c0 = arith.constant 0 : index
    %c0_1 = arith.constant 0 : index
    %c0_2 = arith.constant 0 : index
    %3 = vector.load %arg3[%c0, %c0_1, %c0_2] : memref<1x8x32xbf16, #tpu.memory_space<vmem>>, vector<1x8x32xbf16>
    %4 = vector.shape_cast %3 : vector<1x8x32xbf16> to vector<8x32xbf16>
    %cst = arith.constant 1.767580e-01 : bf16
    %5 = vector.broadcast %cst : bf16 to vector<8x32xbf16>
    %6 = arith.mulf %4, %5 : vector<8x32xbf16>
    %c0_3 = arith.constant 0 : index
    %c0_4 = arith.constant 0 : index
    %c0_5 = arith.constant 0 : index
    %7 = vector.load %arg4[%c0_3, %c0_4, %c0_5] : memref<1x8x32xbf16, #tpu.memory_space<vmem>>, vector<1x8x32xbf16>
    %8 = vector.shape_cast %7 : vector<1x8x32xbf16> to vector<8x32xbf16>
    %c0_6 = arith.constant 0 : index
    %c0_7 = arith.constant 0 : index
    %c0_8 = arith.constant 0 : index
    %9 = vector.load %arg5[%c0_6, %c0_7, %c0_8] : memref<1x8x32xbf16, #tpu.memory_space<vmem>>, vector<1x8x32xbf16>
    %10 = vector.shape_cast %9 : vector<1x8x32xbf16> to vector<8x32xbf16>
    %cst_9 = arith.constant dense<0.000000e+00> : vector<8x8xf32>
    %11 = tpu.matmul %6, %8, %cst_9 {dimension_numbers = #tpu.dot_dimension_numbers<[1], [1], [0], [0], [0, 0, 1, 0], [], []>} : vector<8x32xbf16>, vector<8x32xbf16>, vector<8x8xf32> -> vector<8x8xf32>
    %c0_10 = arith.constant 0 : index
    %c0_11 = arith.constant 0 : index
    %12 = vector.load %arg7[%c0_10, %c0_11] : memref<8x1xf32, #tpu.memory_space<vmem>>, vector<8x1xf32>
    %cst_12 = arith.constant dense<0xFF800000> : vector<8xf32>
    %13 = vector.multi_reduction <maximumf>, %11, %cst_12 [1] : vector<8x8xf32> to vector<8xf32>
    %14 = vector.shape_cast %13 : vector<8xf32> to vector<8x1xf32>
    %15 = arith.maximumf %12, %14 : vector<8x1xf32>
    %16 = arith.subf %12, %15 : vector<8x1xf32>
    %17 = math.exp %16 : vector<8x1xf32>
    %18 = vector.broadcast %15 : vector<8x1xf32> to vector<8x8xf32>
    %19 = arith.subf %11, %18 : vector<8x8xf32>
    %20 = math.exp %19 : vector<8x8xf32>
    %c0_13 = arith.constant 0 : index
    %c0_14 = arith.constant 0 : index
    %21 = vector.load %arg8[%c0_13, %c0_14] : memref<8x1xf32, #tpu.memory_space<vmem>>, vector<8x1xf32>
    %22 = arith.mulf %17, %21 : vector<8x1xf32>
    %cst_15 = arith.constant dense<0.000000e+00> : vector<8xf32>
    %23 = vector.multi_reduction <add>, %20, %cst_15 [1] : vector<8x8xf32> to vector<8xf32>
    %24 = vector.shape_cast %23 : vector<8xf32> to vector<8x1xf32>
    %25 = arith.addf %22, %24 : vector<8x1xf32>
    %c0_16 = arith.constant 0 : index
    %c0_17 = arith.constant 0 : index
    %26 = vector.load %arg8[%c0_16, %c0_17] : memref<8x1xf32, #tpu.memory_space<vmem>>, vector<8x1xf32>
    tpu.vector_store %arg8[%c0_16, %c0_17], %25 {strides = array<i32>} : memref<8x1xf32, #tpu.memory_space<vmem>>, vector<8x1xf32>,
    %c0_18 = arith.constant 0 : index
    %c0_19 = arith.constant 0 : index
    %27 = vector.load %arg9[%c0_18, %c0_19] : memref<8x32xf32, #tpu.memory_space<vmem>>, vector<8x32xf32>
    %28 = vector.broadcast %17 : vector<8x1xf32> to vector<8x32xf32>
    %29 = arith.mulf %28, %27 : vector<8x32xf32>
    %30 = arith.truncf %20 : vector<8x8xf32> to vector<8x8xbf16>
    %cst_20 = arith.constant dense<0.000000e+00> : vector<8x32xf32>
    %31 = tpu.matmul %30, %10, %cst_20 {dimension_numbers = #tpu.dot_dimension_numbers<[1], [0], [0], [1], [0, 0, 1, 1], [], []>} : vector<8x8xbf16>, vector<8x32xbf16>, vector<8x32xf32> -> vector<8x32xf32>
    %32 = arith.addf %29, %31 : vector<8x32xf32>
    %c0_21 = arith.constant 0 : index
    %c0_22 = arith.constant 0 : index
    %33 = vector.load %arg9[%c0_21, %c0_22] : memref<8x32xf32, #tpu.memory_space<vmem>>, vector<8x32xf32>
    tpu.vector_store %arg9[%c0_21, %c0_22], %32 {strides = array<i32>} : memref<8x32xf32, #tpu.memory_space<vmem>>, vector<8x32xf32>,
    %c0_23 = arith.constant 0 : index
    %c0_24 = arith.constant 0 : index
    %34 = vector.load %arg7[%c0_23, %c0_24] : memref<8x1xf32, #tpu.memory_space<vmem>>, vector<8x1xf32>
    tpu.vector_store %arg7[%c0_23, %c0_24], %15 {strides = array<i32>} : memref<8x1xf32, #tpu.memory_space<vmem>>, vector<8x1xf32>,
    %c0_i32_25 = arith.constant 0 : i32
    %35 = arith.cmpi eq, %arg2, %c0_i32_25 : i32
    %36 = arith.extui %35 : i1 to i32
    %c0_i32_26 = arith.constant 0 : i32
    %37 = arith.cmpi ne, %36, %c0_i32_26 : i32
    scf.if %37 {
      %c0_27 = arith.constant 0 : index
      %c0_28 = arith.constant 0 : index
      %38 = vector.load %arg8[%c0_27, %c0_28] : memref<8x1xf32, #tpu.memory_space<vmem>>, vector<8x1xf32>
      %39 = tpu.reciprocal %38 {approx = true} : vector<8x1xf32> -> vector<8x1xf32>
      %c0_29 = arith.constant 0 : index
      %c0_30 = arith.constant 0 : index
      %40 = vector.load %arg9[%c0_29, %c0_30] : memref<8x32xf32, #tpu.memory_space<vmem>>, vector<8x32xf32>
      %41 = vector.broadcast %39 : vector<8x1xf32> to vector<8x32xf32>
      %42 = arith.mulf %40, %41 : vector<8x32xf32>
      %43 = arith.truncf %42 : vector<8x32xf32> to vector<8x32xbf16>
      %c0_31 = arith.constant 0 : index
      %c0_32 = arith.constant 0 : index
      %c0_33 = arith.constant 0 : index
      %44 = vector.load %arg6[%c0_31, %c0_32, %c0_33] : memref<1x8x32xbf16, #tpu.memory_space<vmem>>, vector<1x8x32xbf16>
      %45 = vector.shape_cast %44 : vector<1x8x32xbf16> to vector<8x32xbf16>
      %46 = vector.shape_cast %43 : vector<8x32xbf16> to vector<1x8x32xbf16>
      tpu.vector_store %arg6[%c0_31, %c0_32, %c0_33], %46 {strides = array<i32>} : memref<1x8x32xbf16, #tpu.memory_space<vmem>>, vector<1x8x32xbf16>,
    } else {
    }
    return
  }
  func.func @transform_0(%arg0: i32, %arg1: i32, %arg2: i32) -> (i32, i32, i32) {
    %c0_i32 = arith.constant 0 : i32
    %c0_i32_0 = arith.constant 0 : i32
    return %arg0, %arg1, %c0_i32 : i32, i32, i32
  }
  func.func @transform_1(%arg0: i32, %arg1: i32, %arg2: i32) -> (i32, i32, i32) {
    %c0_i32 = arith.constant 0 : i32
    %c0_i32_0 = arith.constant 0 : i32
    return %arg0, %arg2, %c0_i32 : i32, i32, i32
  }
  func.func @transform_2(%arg0: i32, %arg1: i32, %arg2: i32) -> (i32, i32, i32) {
    %c0_i32 = arith.constant 0 : i32
    %c0_i32_0 = arith.constant 0 : i32
    return %arg0, %arg2, %c0_i32 : i32, i32, i32
  }
  func.func @transform_3(%arg0: i32, %arg1: i32, %arg2: i32) -> (i32, i32, i32) {
    %c0_i32 = arith.constant 0 : i32
    %c0_i32_0 = arith.constant 0 : i32
    return %arg0, %arg1, %c0_i32 : i32, i32, i32
  }
}

</mosaic_0001>

<bundles_post_ra>
// kernel: _flash_attention_bshd.1
= control target key start
LH: loop header
LB: loop body
LE: loop exit
PB: predicated region body
PF: predicated region fallthrough
CT: control target
= control target key end

     0   :  { %s640_s12 = smov 0   ;;  %s642_s13 = smov 0   ;;  %s696_s0 = inlined_call_operand.vmem [shape: bf16[8,8,32], index: 0, kind: input, shape index: {}]   ;;  %s697_s1 = inlined_call_operand.vmem [shape: bf16[8,8,32], index: 1, kind: input, shape index: {}]   ;;  %s698_s2 = inlined_call_operand.vmem [shape: bf16[8,8,32], index: 2, kind: input, shape index: {}]   ;;  %s699_s3 = inlined_call_operand.vmem [shape: bf16[8,8,32], index: 3, kind: output, shape index: {}]  }
   0x1   :  { %s644_s14 = smov 0  }
   0x2 LB: > { %s32_s15 = sadd.s32 1, %s610_s13  ;;  %p531_p0 = scmp.ge.s32.totalorder %s614_s14, 1  ;;  %s614_s14 = sphi %s644_s14, %s13_s14   ;;  %s610_s13 = sphi %s642_s13, %s701_s13   ;;  %s606_s12 = sphi %s640_s12, %s700_s12  }
   0x3   : > { %p34_p1 = scmp.ge.s32.totalorder %s32_s15, 8  ;;  %p190_p2 = scmp.lt.s32.totalorder %s614_s14, 9 }
   0x5   : > { %s703_s15 = smov (%p34_p1, %s32_s15), 0  ;;  %p191_p3 = pnand %p531_p0, %p190_p2 }
   0x6   : > { %p232_p4 = scmp.lt.s32.totalorder (!%p191_p3), %s606_s12, 7  ;;  %vm269_vm0 = vcmask (!%p191_p3), 261120   ;;  %v616_v0 = vmov (!%p191_p3), 0.0   ;;  %vm617_vm1 = vmmov (!%p191_p3), 0   ;;  %vm266_vm2 = vcmask (!%p191_p3), 7168  }
   0x7   : > { %194 = sbr.rel (%p191_p3) target bundleno = 823 (0x337), region = 32  ;;  %544 = vmatprep.subr.bf16.mxu0 (!%p191_p3), %v616_v0  ;;  %270 = vst.msk [vmem:[#allocation4] sm:$0xff] (!%p191_p3), %vm269_vm0, %v616_v0  ;;  %546 = vmatprep.mubr.msk.bf16.mxu0 (!%p191_p3), %vm617_vm1, %v616_v0  ;;  %v618_v5 = vmov (!%p191_p3), -inf   ;;  %vm323_vm3 = vcmask (!%p191_p3), 64512   ;;  %v619_v11 = vmov (!%p191_p3), 0   ;;  %vm358_vm4 = vcmask (!%p191_p3), 1043456  }
   0x8   : > { %550 = vmatprep.subr.bf16.mxu1 (!%p191_p3), %v616_v0  ;;  %552 = vmatprep.mubr.msk.bf16.mxu1 (!%p191_p3), %vm617_vm1, %v616_v0  ;;  %267 = vst.msk [vmem:[#allocation2] sm:$0xff] (!%p191_p3), %vm266_vm2, %v618_v5  ;;  %268 = vst.msk [vmem:[#allocation3] sm:$0xff] (!%p191_p3), %vm266_vm2, %v616_v0  ;;  %vm418_vm5 = vcmask (!%p191_p3), 257024  }
   0x9   : > { %584 = vset.pattern.permute.xlu0 (!%p191_p3), %v619_v11  ;;  %585 = vset.pattern.permute.xlu1 (!%p191_p3), %v619_v11 }
   0xe   : > { %s705_s12 = smov (!%p232_p4, %s606_s12), 7  ;;  %v347_v32 = vld [vmem:[#allocation4] sm:$0xff] }
   0xf   : > { %s659_s16 = sshll.u32 %s705_s12, 2  ;;  %v322_v12 = vld [vmem:[#allocation2] sm:$0xff]  ;;  %v339_v26 = vld [vmem:[#allocation3] sm:$0xff] }
  0x10   : > { %s245_s19 = scalar_lea.vmem %s697_s1, %s659_s16  ;;  %s238_s22 = scalar_lea.vmem %s696_s0, %s659_s16 }
  0x11   : > { %v273_v1 = vld [vmem:[%s245_s19] sm:$0xf]  ;;  %s252_s25 = scalar_lea.vmem %s698_s2, %s659_s16  ;;  %s259_s28 = scalar_lea.vmem %s699_s3, %s659_s16 }
  0x12   : > { %v280_v2 = vsel %vm269_vm0, %v273_v1, 0  ;;  %v271_v3 = vld [vmem:[%s238_s22] sm:$0xf] }
  0x13   : > { %545 = vmatpush3.bf16.xpose.msra.mxu0 %v280_v2  ;;  %v272_v4 = vmul.bf16 1043676725, %v271_v3  ;;  %v274_v16 = vld [vmem:[%s252_s25] sm:$0xf] }
  0x14   : > { %v360_v17 = vsel %vm358_vm4, %v274_v16, 0 }
  0x15   : > { %551 = vmatpush3.bf16.msra.mxu1 %v360_v17 }
  0x1a   : > { %547 = vmatmul.mubr.msk.bf16.vlgmr.msra.gmra.mrb[0].mxu0 %vm269_vm0, %v272_v4 }
  0xed   : > { %v316_v6 = vpop.f32.mrb[0].mxu0 }
  0xee   : > { %v548_v7 = vpop.f32.mrb[1].mxu0  ;;  %v324_v8 = vsel %vm323_vm3, %v316_v6, -inf }
  0xef   : > { %325 = vmax.xlane.f32.xlu0 %v324_v8  ;;  %v319_v9 = vpop.f32.mrb[2].mxu0 }
  0xf0   : > { %v549_v10 = vpop.f32.mrb[3].mxu0 }
 0x17c   : > { %v326_v13 = vpop.xlane.xlu0 %325 }
 0x17d   : > { %v327_v14 = vmax.f32 %v322_v12, %v326_v13 }
 0x17f   : > { %v328_v15 = vsub.f32 %v322_v12, %v327_v14  ;;  %404 = vst.msk [vmem:[#allocation2] sm:$0xff] %vm266_vm2, %v327_v14  ;;  %333 = vperm.xlu0 %584, %v327_v14  }
 0x181   : > { %v329_v24 = vmul.f32 1.442695, %v328_v15 }
 0x1fe   : > { %v334_v18 = vpop.permute.xlu0 %333 }
 0x1ff   : > { %v336_v19 = vsub.f32 %v316_v6, %v334_v18 }
 0x201   : > { %v337_v20 = vmul.f32 1.442695, %v336_v19 }
 0x203   : > { %586 = vpow2.f32 %v337_v20 }
 0x204   : > { %588 = vpow2.f32 %v329_v24 }
 0x20d   : > { %v587_v21 = vpop.eup %586 }
 0x20e   : > { %v341_v22 = vsel %vm323_vm3, %v587_v21, 0.0  ;;  %v354_v23 = vpack.c.bf16 %v587_v21, %v587_v21  ;;  %v589_v25 = vpop.eup %588 }
 0x20f   : > { %342 = vadd.xlane.f32.xlu1 %v341_v22  ;;  %v340_v27 = vmul.f32 %v589_v25, %v339_v26 }
 0x210   : > { %553 = vmatmul.mubr.msk.bf16.vlgmr.msra.gmra.mrb[0].mxu1 %vm323_vm3, %v354_v23 }
 0x220   : > { %350 = vperm.xlu1 %585, %v589_v25  }
 0x29c   : > { %v343_v28 = vpop.xlane.xlu1 %342 }
 0x29d   : > { %v344_v29 = vadd.f32 %v343_v28, %v340_v27 }
 0x29f   : > { %346 = vst.msk [vmem:[#allocation3] sm:$0xff] %vm266_vm2, %v344_v29 }
 0x2a0   : > { %v351_v33 = vpop.permute.xlu1 %350 }
 0x2a1   : > { %v353_v34 = vmul.f32 %v351_v33, %v347_v32 }
 0x2a6   : > { %v408_v30 = vld [vmem:[#allocation3] sm:$0xff] }
 0x2a7   : > { %590 = vrcp.f32 %v408_v30 }
 0x2b1   : > { %v591_v31 = vpop.eup %590 }
 0x2b2   : > { %413 = vperm.xlu1 %585, %v591_v31  }
 0x2e3   : > { %v396_v35 = vpop.f32.mrb[0].mxu1 }
 0x2e4   : > { %v402_v36 = vadd.f32 %v396_v35, %v353_v34  ;;  %v554_v37 = vpop.f32.mrb[1].mxu1 }
 0x2e5   : > { %v399_v38 = vpop.f32.mrb[2].mxu1 }
 0x2e6   : > { %403 = vst.msk [vmem:[#allocation4] sm:$0xff] %vm269_vm0, %v402_v36  ;;  %v555_v39 = vpop.f32.mrb[3].mxu1 }
 0x2ed   : > { %v410_v40 = vld [vmem:[#allocation4] sm:$0xff] }
 0x331   : > { %v414_v41 = vpop.permute.xlu1 %413 }
 0x332   : > { %v416_v42 = vmul.f32 %v414_v41, %v410_v40 }
 0x334   : > { %v417_v43 = vpack.c.bf16 %v416_v42, %v416_v42 }
 0x336   : > { %419 = vst.msk [vmem:[%s259_s28] sm:$0xf] %vm418_vm5, %v417_v43 }
 0x337 PF: > { %s13_s14 = sadd.s32 1, %s614_s14   ;;  %s700_s12 = smov %s610_s13 }
 0x338   : > { %p10_p5 = scmp.ge.s32.totalorder %s13_s14, 10   ;;  %s701_s13 = smov %s703_s15 }
 0x33a   :  { %12 = sbr.rel (!%p10_p5) target bundleno = 2 (0x2), region = 76 }

</bundles_post_ra>
